<compile_context>
chip_gen: v7x
topology: tpu7x:2x2x1
jax: 0.10.0
libtpu: 0.0.40
codegen_flags: <defaults>
</compile_context>

<pallas_src>
import functools
import math

import jax
import jax.numpy as jnp
from jax import lax
from jax.experimental import pallas as pl
from jax.experimental.pallas import tpu as pltpu

LANES = 128


def _default_block_bytes():
    # v7x HBM (~3.2 TB/s/TC) makes the ~0.35us/grid-step overhead visible at
    # 2 MiB tiles -> use 8 MiB there; 2 MiB elsewhere (already ~85% of roofline
    # and safe under the 16 MiB scoped-VMEM default on v5e).
    try:
        kind = jax.devices()[0].device_kind.lower()
        if ("v7" in kind) or ("tpu7" in kind):
            return 8 * 1024 * 1024
    except Exception:
        pass
    return 2 * 1024 * 1024


TARGET_BLOCK_BYTES = _default_block_bytes()


def signed_minmax(bit):
    return -(2 ** (bit - 1)), 2 ** (bit - 1) - 1


# ----------------------------------------------------------------------------
# Kernel 1: observer |x| statistics -- mode-specialized streaming reduction.
#   mode='lsq'    -> running sum of |x|         (1 output slab)
#   mode='minmax' -> running min / max of |x|   (2 output slabs)
# ----------------------------------------------------------------------------
def _abs_reduce_kernel(x_ref, out_ref, *, mode, rows, tile_r, width,
                       tiles_per_split, needs_mask, acc_rows):
    p = pl.program_id(0)  # split (TensorCore) index  -> "parallel"
    i = pl.program_id(1)  # tile within the split     -> "arbitrary" (carries out_ref)

    y = jnp.abs(x_ref[...].astype(jnp.float32))
    g = tile_r // acc_rows

    def fold(v, red):
        if g > 1:
            # Leading-axis reduce == elementwise ops between vregs (VPU only).
            return red(v.reshape(g, acc_rows, width), axis=0)
        return v

    @pl.when(i == 0)
    def _init():
        if mode == "lsq":
            out_ref[0] = jnp.zeros((acc_rows, width), jnp.float32)
        else:
            out_ref[0] = jnp.full((acc_rows, width), jnp.inf, jnp.float32)  # min id
            out_ref[1] = jnp.zeros((acc_rows, width), jnp.float32)          # max id (|x|>=0)

    def _accum(yv_sum, yv_min=None):
        if mode == "lsq":
            out_ref[0] = out_ref[0] + fold(yv_sum, jnp.sum)
        else:
            out_ref[0] = jnp.minimum(out_ref[0], fold(yv_min, jnp.min))
            out_ref[1] = jnp.maximum(out_ref[1], fold(yv_sum, jnp.max))

    if not needs_mask:
        _accum(y, y)
    else:
        # Only the tile that actually overlaps the ragged tail (or a clamped,
        # fully out-of-range tile) pays for the iota/compare/select masking.
        row0 = (p * tiles_per_split + i) * tile_r
        is_partial = row0 + tile_r > rows

        @pl.when(jnp.logical_not(is_partial))
        def _fast():
            _accum(y, y)

        @pl.when(is_partial)
        def _tail():
            rid = row0 + lax.broadcasted_iota(jnp.int32, (tile_r, width), 0)
            valid = rid < rows
            if mode == "lsq":
                _accum(jnp.where(valid, y, 0.0))
            else:
                _accum(jnp.where(valid, y, 0.0), jnp.where(valid, y, jnp.inf))


def _pick_row_tile(rows, width, itemsize, max_rows=None):
    """Largest multiple-of-8 row tile keeping one block under TARGET_BLOCK_BYTES."""
    if rows <= 8:
        return int(rows)
    bytes_per_row = max(1, width * itemsize)
    t = max(8, (TARGET_BLOCK_BYTES // bytes_per_row) // 8 * 8)
    if max_rows is not None:
        t = min(t, max(8, (max_rows // 8) * 8))
    return int(min(t, (rows // 8) * 8))


def _abs_reduce(x, mode, *, max_block_rows=None, small_fallback_elems=1024):
    """mode='lsq' -> (mean(|x|),) ; mode='minmax' -> (min(|x|), max(|x|))."""
    n = int(x.size)
    assert n > 0, "observer input must be non-empty"

    if n < small_fallback_elems:
        y = jnp.abs(x.astype(jnp.float32))
        return (y.mean(),) if mode == "lsq" else (y.min(), y.max())

    # Lane-dense (n//128, 128) view; a <128-element tail is folded in plain JAX.
    tail_vals = None
    if n % LANES == 0:
        x2d = x.reshape(n // LANES, LANES)
    else:
        n_main = (n // LANES) * LANES
        flat = x.reshape(-1)
        x2d = lax.slice(flat, (0,), (n_main,)).reshape(n_main // LANES, LANES)
        tail_vals = jnp.abs(lax.slice(flat, (n_main,), (n,)).astype(jnp.float32))
    rows, width = int(x2d.shape[0]), int(x2d.shape[1])

    tile_r = _pick_row_tile(rows, width, x2d.dtype.itemsize, max_block_rows)
    num_tiles = pl.cdiv(rows, tile_r)
    splits = 2 if num_tiles >= 2 else 1          # 2 TCs on v7x; a 2-way loop elsewhere
    tps = pl.cdiv(num_tiles, splits)             # tiles per split
    acc_rows = 8 if tile_r % 8 == 0 else tile_r  # partial-slab height
    needs_mask = (num_tiles * tile_r != rows) or (splits * tps != num_tiles)

    if splits * tps == num_tiles:
        in_map = lambda p, i: (p * tps + i, 0)
    else:
        # Clamp fully-out-of-range tiles onto the last real tile; the in-kernel
        # mask (based on the unclamped offset) zeroes their contribution.
        last = num_tiles - 1
        in_map = lambda p, i: (jnp.minimum(p * tps + i, last), 0)

    n_stats = 1 if mode == "lsq" else 2
    kern = functools.partial(
        _abs_reduce_kernel, mode=mode, rows=rows, tile_r=tile_r, width=width,
        tiles_per_split=tps, needs_mask=needs_mask, acc_rows=acc_rows)

    parts = pl.pallas_call(
        kern,
        out_shape=jax.ShapeDtypeStruct((splits * n_stats, acc_rows, width), jnp.float32),
        grid_spec=pltpu.PrefetchScalarGridSpec(
            num_scalar_prefetch=0,
            grid=(splits, tps),
            in_specs=[pl.BlockSpec((tile_r, width), in_map)],
            out_specs=pl.BlockSpec((n_stats, acc_rows, width), lambda p, i: (p, 0, 0)),
        ),
        compiler_params=pltpu.CompilerParams(
            dimension_semantics=("parallel", "arbitrary")),
    )(x2d)

    parts = parts.reshape(splits, n_stats, acc_rows, width)
    if mode == "lsq":
        total = jnp.sum(parts[:, 0])
        if tail_vals is not None:
            total = total + jnp.sum(tail_vals)
        return (total / jnp.float32(n),)
    t_min = jnp.min(parts[:, 0])
    t_max = jnp.max(parts[:, 1])
    if tail_vals is not None:
        t_min = jnp.minimum(t_min, jnp.min(tail_vals))
        t_max = jnp.maximum(t_max, jnp.max(tail_vals))
    return (t_min, t_max)


def abs_mean(x, **kw):
    return _abs_reduce(x, "lsq", **kw)[0]


def abs_minmax(x, **kw):
    return _abs_reduce(x, "minmax", **kw)


# ----------------------------------------------------------------------------
# Kernel 2: weight quantization  w_int = round(clamp(w / w_s, Qn, Qp)) -> bf16
# ----------------------------------------------------------------------------
def _quant_kernel(w_ref, s_ref, o_ref, *, qn, qp):
    s = s_ref[0]  # SMEM scalar
    q = jnp.clip(w_ref[...].astype(jnp.float32) / s, float(qn), float(qp))
    o_ref[...] = jnp.round(q).astype(o_ref.dtype)  # ints <= 127: exact in bf16


def quantize_weight(weight, w_s, qn, qp):
    rows, cols = int(weight.shape[0]), int(weight.shape[1])
    tile_r = _pick_row_tile(rows, cols, weight.dtype.itemsize)
    s1 = jnp.asarray(w_s, jnp.float32).reshape(1)
    return pl.pallas_call(
        functools.partial(_quant_kernel, qn=qn, qp=qp),
        out_shape=jax.ShapeDtypeStruct((rows, cols), jnp.bfloat16),
        grid_spec=pltpu.PrefetchScalarGridSpec(
            num_scalar_prefetch=0,
            grid=(pl.cdiv(rows, tile_r),),
            in_specs=[pl.BlockSpec((tile_r, cols), lambda i: (i, 0)),
                      pl.BlockSpec(memory_space=pltpu.MemorySpace.SMEM)],
            out_specs=pl.BlockSpec((tile_r, cols), lambda i: (i, 0)),
        ),
        compiler_params=pltpu.CompilerParams(dimension_semantics=("parallel",)),
    )(weight, s1)


# ----------------------------------------------------------------------------
# Kernel 3: quantized linear  out = (x @ w_int.T) * w_s + b_int * b_s
#   (mathematically identical to ((x / a_s) @ w_int.T + b_int) * b_s since
#    b_s = w_s * a_s -- the per-element x/a_s is folded out of the K loop)
# ----------------------------------------------------------------------------
def _qmatmul_kernel(x_ref, w_ref, b_ref, ws_ref, o_ref):
    @pl.when(pl.program_id(2) == 0)
    def _zero():
        o_ref[...] = jnp.zeros_like(o_ref)

    # bf16 x bf16 -> f32 on the MXU; accumulate directly into the resident
    # f32 output block (its index_map ignores k).
    o_ref[...] += lax.dot_general(
        x_ref[...].astype(jnp.bfloat16), w_ref[...],
        dimension_numbers=(((1,), (1,)), ((), ())),
        preferred_element_type=jnp.float32)

    @pl.when(pl.program_id(2) == pl.num_programs(2) - 1)
    def _finalize():
        o_ref[...] = o_ref[...] * ws_ref[0] + b_ref[...]


def _round_up(v, m):
    return ((v + m - 1) // m) * m


def _pick_tile(dim, pref, align):
    """Returns (tile, padded_dim). Prefers pref / pref//2 divisors; otherwise
    pads to an aligned tile (never a full-dim giant block)."""
    for cand in (pref, pref // 2):
        if cand >= align and dim % cand == 0:
            return cand, dim
    if dim < pref:
        tile = _round_up(dim, align)
        return tile, tile
    return pref, _round_up(dim, pref)


def qlinear_matmul(x, w_int, b_scaled, w_s):
    lead = x.shape[:-1]
    k_dim = int(x.shape[-1])
    m_dim = int(math.prod(lead)) if lead else 1
    n_dim = int(w_int.shape[0])

    # 256x256 output tiles / 512-wide K tiles feed the v6e/v7x 2x256x256 MXU;
    # working set ~2 MiB so no vmem_limit override needed on any generation.
    tm, mp = _pick_tile(m_dim, 256, 8)
    tn, np_ = _pick_tile(n_dim, 256, 128)
    tk, kp = _pick_tile(k_dim, 512, 128)

    x2 = x.reshape(m_dim, k_dim)
    if (mp, kp) != (m_dim, k_dim):
        x2 = jnp.pad(x2, ((0, mp - m_dim), (0, kp - k_dim)))
    w2 = jnp.asarray(w_int, jnp.bfloat16)
    if (np_, kp) != (n_dim, k_dim):
        w2 = jnp.pad(w2, ((0, np_ - n_dim), (0, kp - k_dim)))
    b2 = jnp.asarray(b_scaled, jnp.float32).reshape(1, n_dim)
    if np_ != n_dim:
        b2 = jnp.pad(b2, ((0, 0), (0, np_ - n_dim)))
    ws1 = jnp.asarray(w_s, jnp.float32).reshape(1)

    out = pl.pallas_call(
        _qmatmul_kernel,
        out_shape=jax.ShapeDtypeStruct((mp, np_), jnp.float32),
        grid_spec=pltpu.PrefetchScalarGridSpec(
            num_scalar_prefetch=0,
            grid=(mp // tm, np_ // tn, kp // tk),
            in_specs=[pl.BlockSpec((tm, tk), lambda i, j, k: (i, k)),
                      pl.BlockSpec((tn, tk), lambda i, j, k: (j, k)),
                      pl.BlockSpec((1, tn), lambda i, j, k: (0, j)),
                      pl.BlockSpec(memory_space=pltpu.MemorySpace.SMEM)],
            out_specs=pl.BlockSpec((tm, tn), lambda i, j, k: (i, j)),
        ),
        compiler_params=pltpu.CompilerParams(
            dimension_semantics=("parallel", "parallel", "arbitrary")),
    )(x2, w2, b2, ws1)
    out = out[:m_dim, :n_dim]
    return out.reshape(*lead, n_dim)


# ----------------------------------------------------------------------------
# QLinear.forward (training path), functional.
# ----------------------------------------------------------------------------
def _observer_scale(weight, qn, qp, mode):
    # TODO(synk): get_scale_func('lsq', Qn, Qp) is not defined in the provided
    # spec; standard LSQ initialisation 2*mean(|w|)/sqrt(Qp) is assumed for
    # mode='lsq' ('minmax' |w|-range scale also provided).
    if mode == "lsq":
        return 2.0 * abs_mean(weight) / math.sqrt(qp)
    if mode == "minmax":
        t_min, t_max = abs_minmax(weight)
        return (t_max - t_min) / float(qp - qn)
    raise ValueError(f"unknown observer mode: {mode}")


@functools.partial(jax.jit, static_argnames=("to_bit", "bias_bit", "mode",
                                             "calibrate_count", "momentum"))
def qlinear_forward(x, a_s, weight, bias, obs_scale, obs_counter, *,
                    to_bit=8, bias_bit=32, mode="lsq",
                    calibrate_count=1, momentum=0.1):
    """Training-mode QLinear.forward(x, a_s).

    Returns (out, b_s, w_s, new_counter, w_int, b_int); (out, b_s) mirror the
    PyTorch return value, the rest are the updated module buffers.
    w_int is returned in bf16 (its integer values are exact).
    """
    qn, qp = signed_minmax(to_bit)
    bqn, bqp = signed_minmax(bias_bit)

    # --- LSQObserver(weight): |w| statistics via the Pallas reduction kernel.
    # (first-call std/mean debug print of the PyTorch observer is skipped)
    s_new = _observer_scale(weight, qn, qp, mode)
    m = jnp.float32(momentum)
    in_calib = obs_counter < calibrate_count
    is_first = obs_counter == 0
    w_s = jnp.where(is_first, s_new,
                    jnp.where(in_calib, (1.0 - m) * obs_scale + m * s_new,
                              obs_scale))
    new_counter = jnp.where(in_calib, obs_counter + 1, obs_counter)
    # grad_scale(scale, g) only rescales the gradient; forward returns scale.

    b_s = w_s * a_s
    w_int = quantize_weight(weight, w_s, qn, qp)          # Pallas kernel -> bf16
    b_int = jnp.round(jnp.clip(bias / b_s, bqn, bqp))     # tiny (out_features,) op
    # TODO(synk): bias=None path (F.linear without bias) not wired in this wrapper.
    b_scaled = b_int * b_s
    out = qlinear_matmul(x, w_int, b_scaled, w_s)         # Pallas MXU kernel
    return out, b_s, w_s, new_counter, w_int, b_int


# ----------------------------------------------------------------------------
if __name__ == "__main__":
    B, SEQ, IN_F, OUT_F = 2, 8, 32, 64
    TO_BIT, BIAS_BIT = 8, 32
    MODE, CALIB, MOM = "lsq", 2, 0.1

    key = jax.random.PRNGKey(0)
    kx1, kx2, kw, kb = jax.random.split(key, 4)
    weight = 0.02 * jax.random.normal(kw, (OUT_F, IN_F), dtype=jnp.float32)
    bias = 0.01 * jax.random.normal(kb, (OUT_F,), dtype=jnp.float32)
    x1 = jax.random.normal(kx1, (B, SEQ, IN_F), dtype=jnp.float32)
    x2 = jax.random.normal(kx2, (B, SEQ, IN_F), dtype=jnp.float32)
    a_s = jnp.float32(0.05)

    obs_scale = jnp.float32(0.0)   # observer 'scale' buffer (set on first call)
    obs_counter = jnp.int32(0)     # observer 'counter' buffer

    qn, qp = signed_minmax(TO_BIT)
    bqn, bqp = signed_minmax(BIAS_BIT)

    def ref_scale_step(w, scale, counter):
        y = jnp.abs(w.astype(jnp.float32))
        s_new = 2.0 * y.mean() / math.sqrt(qp) if MODE == "lsq" \
            else (y.max() - y.min()) / float(qp - qn)
        c = int(counter)
        if c == 0:
            ns = s_new
        elif c < CALIB:
            ns = (1.0 - MOM) * scale + MOM * s_new
        else:
            ns = scale
        return ns, (c + 1 if c < CALIB else c)

    def ref_out_given(w_int, b_int, b_s, x):
        x_q = x / a_s
        return (jnp.einsum("bsk,nk->bsn", x_q, jnp.asarray(w_int, jnp.float32),
                           precision=lax.Precision.HIGHEST) + b_int) * b_s

    # --- call 1: counter == 0 -> scale initialised from |weight| stats.
    out1, b_s1, w_s1, obs_counter, w_int1, b_int1 = qlinear_forward(
        x1, a_s, weight, bias, obs_scale, obs_counter, to_bit=TO_BIT,
        bias_bit=BIAS_BIT, mode=MODE, calibrate_count=CALIB, momentum=MOM)
    obs_scale = w_s1
    jax.block_until_ready((out1, b_s1, w_s1, obs_counter, w_int1, b_int1))

    ref_s1, ref_c1 = ref_scale_step(weight, 0.0, 0)
    assert jnp.allclose(w_s1, ref_s1, rtol=1e-5, atol=1e-8)
    assert int(obs_counter) == ref_c1 == 1
    assert jnp.allclose(b_s1, ref_s1 * a_s, rtol=1e-5, atol=1e-8)
    assert jnp.allclose(jnp.asarray(w_int1, jnp.float32),
                        jnp.round(jnp.clip(weight / w_s1, qn, qp)), atol=1e-5)
    assert jnp.allclose(b_int1, jnp.round(jnp.clip(bias / b_s1, bqn, bqp)), atol=1e-5)
    assert jnp.allclose(out1, ref_out_given(w_int1, b_int1, b_s1, x1),
                        rtol=5e-3, atol=5e-3)

    # --- call 2: 0 < counter < calibrate_count -> momentum blend of the scale.
    out2, b_s2, w_s2, obs_counter, w_int2, b_int2 = qlinear_forward(
        x2, a_s, weight * 1.5, bias, obs_scale, obs_counter, to_bit=TO_BIT,
        bias_bit=BIAS_BIT, mode=MODE, calibrate_count=CALIB, momentum=MOM)
    obs_scale = w_s2
    jax.block_until_ready((out2, w_s2, obs_counter))
    ref_s2, ref_c2 = ref_scale_step(weight * 1.5, ref_s1, ref_c1)
    assert jnp.allclose(w_s2, ref_s2, rtol=1e-5, atol=1e-8)
    assert int(obs_counter) == ref_c2 == 2
    assert jnp.allclose(out2, ref_out_given(w_int2, b_int2, b_s2, x2),
                        rtol=5e-3, atol=5e-3)

    # --- call 3: counter == calibrate_count -> scale frozen.
    out3, b_s3, w_s3, obs_counter, _, _ = qlinear_forward(
        x1, a_s, weight, bias, obs_scale, obs_counter, to_bit=TO_BIT,
        bias_bit=BIAS_BIT, mode=MODE, calibrate_count=CALIB, momentum=MOM)
    jax.block_until_ready((out3, w_s3, obs_counter))
    assert jnp.allclose(w_s3, w_s2, rtol=0, atol=0)
    assert int(obs_counter) == 2

    # --- standalone checks of the reduction kernel's tiled paths:
    #     multi-tile accumulation, 2-way core split, ragged tail (lane-dense
    #     prefix + plain-JAX tail), and the clamped out-of-range tile.
    for shape, max_rows in (((256, 128), 64),   # multi-tile, even split
                            ((37, 51), 8),      # n % 128 != 0 -> prefix + tail
                            ((24, 128), 8)):    # odd tile count -> clamped tile
        z = jax.random.normal(jax.random.PRNGKey(7), shape, dtype=jnp.float32)
        y = jnp.abs(z)
        k_mean = abs_mean(z, max_block_rows=max_rows)
        k_min, k_max = abs_minmax(z, max_block_rows=max_rows)
        jax.block_until_ready((k_mean, k_min, k_max))
        assert jnp.allclose(k_mean, y.mean(), rtol=1e-5, atol=1e-8)
        assert jnp.allclose(k_min, y.min(), rtol=0, atol=0)
        assert jnp.allclose(k_max, y.max(), rtol=0, atol=0)

    print("KERNEL_OK")
</pallas_src>

<mosaic_0001>
module attributes {stable_mosaic.version = 11 : i64} {
  func.func @_abs_reduce_kernel(%arg0: i32, %arg1: i32, %arg2: memref<16x128xf32, #tpu.memory_space<vmem>>, %arg3: memref<1x8x128xf32, #tpu.memory_space<vmem>>) attributes {dimension_semantics = [#tpu.dimension_semantics<parallel>, #tpu.dimension_semantics<arbitrary>], iteration_bounds = array<i64: 1, 1>, scalar_prefetch = 0 : i64, scratch_operands = 0 : i64, tpu.core_type = #tpu.core_type<tc>, window_params = [{transform_indices = @transform_0, window_bounds = array<i64: 16, 128>}, {transform_indices = @transform_1, window_bounds = array<i64: 1, 8, 128>}]} {
    %c0 = arith.constant 0 : index
    %c0_0 = arith.constant 0 : index
    %0 = vector.load %arg2[%c0, %c0_0] : memref<16x128xf32, #tpu.memory_space<vmem>>, vector<16x128xf32>
    %1 = math.absf %0 : vector<16x128xf32>
    %c0_i32 = arith.constant 0 : i32
    %2 = arith.cmpi eq, %arg1, %c0_i32 : i32
    %3 = arith.extui %2 : i1 to i32
    %c0_i32_1 = arith.constant 0 : i32
    %4 = arith.cmpi ne, %3, %c0_i32_1 : i32
    scf.if %4 {
      %cst_8 = arith.constant 0.000000e+00 : f32
      %13 = vector.broadcast %cst_8 : f32 to vector<8x128xf32>
      %c0_9 = arith.constant 0 : index
      %c0_10 = arith.constant 0 : index
      %c0_11 = arith.constant 0 : index
      %14 = vector.load %arg3[%c0_9, %c0_10, %c0_11] : memref<1x8x128xf32, #tpu.memory_space<vmem>>, vector<1x8x128xf32>
      %15 = vector.shape_cast %14 : vector<1x8x128xf32> to vector<8x128xf32>
      %16 = vector.shape_cast %13 : vector<8x128xf32> to vector<1x8x128xf32>
      tpu.vector_store %arg3[%c0_9, %c0_10, %c0_11], %16 {strides = array<i32>} : memref<1x8x128xf32, #tpu.memory_space<vmem>>, vector<1x8x128xf32>,
    } else {
    }
    %c0_2 = arith.constant 0 : index
    %c0_3 = arith.constant 0 : index
    %c0_4 = arith.constant 0 : index
    %5 = vector.load %arg3[%c0_2, %c0_3, %c0_4] : memref<1x8x128xf32, #tpu.memory_space<vmem>>, vector<1x8x128xf32>
    %6 = vector.shape_cast %5 : vector<1x8x128xf32> to vector<8x128xf32>
    %7 = vector.shape_cast %1 : vector<16x128xf32> to vector<2x8x128xf32>
    %cst = arith.constant dense<0.000000e+00> : vector<8x128xf32>
    %8 = vector.multi_reduction <add>, %7, %cst [0] : vector<2x8x128xf32> to vector<8x128xf32>
    %9 = arith.addf %6, %8 : vector<8x128xf32>
    %c0_5 = arith.constant 0 : index
    %c0_6 = arith.constant 0 : index
    %c0_7 = arith.constant 0 : index
    %10 = vector.load %arg3[%c0_5, %c0_6, %c0_7] : memref<1x8x128xf32, #tpu.memory_space<vmem>>, vector<1x8x128xf32>
    %11 = vector.shape_cast %10 : vector<1x8x128xf32> to vector<8x128xf32>
    %12 = vector.shape_cast %9 : vector<8x128xf32> to vector<1x8x128xf32>
    tpu.vector_store %arg3[%c0_5, %c0_6, %c0_7], %12 {strides = array<i32>} : memref<1x8x128xf32, #tpu.memory_space<vmem>>, vector<1x8x128xf32>,
    return
  }
  func.func @transform_0(%arg0: i32, %arg1: i32) -> (i32, i32) {
    %c1_i32 = arith.constant 1 : i32
    %0 = arith.muli %arg0, %c1_i32 : i32
    %1 = arith.addi %0, %arg1 : i32
    %c0_i32 = arith.constant 0 : i32
    %c0_i32_0 = arith.constant 0 : i32
    return %1, %c0_i32 : i32, i32
  }
  func.func @transform_1(%arg0: i32, %arg1: i32) -> (i32, i32, i32) {
    %c0_i32 = arith.constant 0 : i32
    %c0_i32_0 = arith.constant 0 : i32
    %c0_i32_1 = arith.constant 0 : i32
    return %arg0, %c0_i32, %c0_i32_0 : i32, i32, i32
  }
}

module attributes {stable_mosaic.version = 11 : i64} {
  func.func @_quant_kernel(%arg0: i32, %arg1: memref<64x32xf32, #tpu.memory_space<vmem>>, %arg2: memref<1xf32, #tpu.memory_space<smem>>, %arg3: memref<64x32xbf16, #tpu.memory_space<vmem>>) attributes {dimension_semantics = [#tpu.dimension_semantics<parallel>], iteration_bounds = array<i64: 1>, scalar_prefetch = 0 : i64, scratch_operands = 0 : i64, tpu.core_type = #tpu.core_type<tc>, window_params = [{transform_indices = @transform_0, window_bounds = array<i64: 64, 32>}, {transform_indices = @transform_1, window_bounds = array<i64: 1>}, {transform_indices = @transform_2, window_bounds = array<i64: 64, 32>}]} {
    %c0 = arith.constant 0 : index
    %0 = memref.load %arg2[%c0] : memref<1xf32, #tpu.memory_space<smem>>
    %c0_0 = arith.constant 0 : index
    %c0_1 = arith.constant 0 : index
    %1 = vector.load %arg1[%c0_0, %c0_1] : memref<64x32xf32, #tpu.memory_space<vmem>>, vector<64x32xf32>
    %2 = vector.broadcast %0 : f32 to vector<64x32xf32>
    %3 = arith.divf %1, %2 : vector<64x32xf32>
    %cst = arith.constant -1.280000e+02 : f32
    %cst_2 = arith.constant 1.270000e+02 : f32
    %4 = vector.broadcast %cst : f32 to vector<64x32xf32>
    %5 = arith.maximumf %4, %3 : vector<64x32xf32>
    %6 = vector.broadcast %cst_2 : f32 to vector<64x32xf32>
    %7 = arith.minimumf %6, %5 : vector<64x32xf32>
    %8 = math.roundeven %7 : vector<64x32xf32>
    %9 = arith.truncf %8 : vector<64x32xf32> to vector<64x32xbf16>
    %c0_3 = arith.constant 0 : index
    %c0_4 = arith.constant 0 : index
    %10 = vector.load %arg3[%c0_3, %c0_4] : memref<64x32xbf16, #tpu.memory_space<vmem>>, vector<64x32xbf16>
    tpu.vector_store %arg3[%c0_3, %c0_4], %9 {strides = array<i32>} : memref<64x32xbf16, #tpu.memory_space<vmem>>, vector<64x32xbf16>,
    return
  }
  func.func @transform_0(%arg0: i32) -> (i32, i32) {
    %c0_i32 = arith.constant 0 : i32
    %c0_i32_0 = arith.constant 0 : i32
    return %arg0, %c0_i32 : i32, i32
  }
  func.func @transform_1(%arg0: i32) -> i32 {
    %c0_i32 = arith.constant 0 : i32
    %c0_i32_0 = arith.constant 0 : i32
    return %c0_i32 : i32
  }
  func.func @transform_2(%arg0: i32) -> (i32, i32) {
    %c0_i32 = arith.constant 0 : i32
    %c0_i32_0 = arith.constant 0 : i32
    return %arg0, %c0_i32 : i32, i32
  }
}

module attributes {stable_mosaic.version = 11 : i64} {
  func.func @_qmatmul_kernel(%arg0: i32, %arg1: i32, %arg2: i32, %arg3: memref<16x128xf32, #tpu.memory_space<vmem>>, %arg4: memref<128x128xbf16, #tpu.memory_space<vmem>>, %arg5: memref<1x128xf32, #tpu.memory_space<vmem>>, %arg6: memref<1xf32, #tpu.memory_space<smem>>, %arg7: memref<16x128xf32, #tpu.memory_space<vmem>>) attributes {dimension_semantics = [#tpu.dimension_semantics<parallel>, #tpu.dimension_semantics<parallel>, #tpu.dimension_semantics<arbitrary>], iteration_bounds = array<i64: 1, 1, 1>, scalar_prefetch = 0 : i64, scratch_operands = 0 : i64, tpu.core_type = #tpu.core_type<tc>, window_params = [{transform_indices = @transform_0, window_bounds = array<i64: 16, 128>}, {transform_indices = @transform_1, window_bounds = array<i64: 128, 128>}, {transform_indices = @transform_2, window_bounds = array<i64: 1, 128>}, {transform_indices = @transform_3, window_bounds = array<i64: 1>}, {transform_indices = @transform_4, window_bounds = array<i64: 16, 128>}]} {
    %c0_i32 = arith.constant 0 : i32
    %0 = arith.cmpi eq, %arg2, %c0_i32 : i32
    %1 = arith.extui %0 : i1 to i32
    %c0_i32_0 = arith.constant 0 : i32
    %2 = arith.cmpi ne, %1, %c0_i32_0 : i32
    scf.if %2 {
      %cst_10 = arith.constant 0.000000e+00 : f32
      %13 = vector.broadcast %cst_10 : f32 to vector<16x128xf32>
      %c0_11 = arith.constant 0 : index
      %c0_12 = arith.constant 0 : index
      %14 = vector.load %arg7[%c0_11, %c0_12] : memref<16x128xf32, #tpu.memory_space<vmem>>, vector<16x128xf32>
      tpu.vector_store %arg7[%c0_11, %c0_12], %13 {strides = array<i32>} : memref<16x128xf32, #tpu.memory_space<vmem>>, vector<16x128xf32>,
    } else {
    }
    %c0 = arith.constant 0 : index
    %c0_1 = arith.constant 0 : index
    %3 = vector.load %arg7[%c0, %c0_1] : memref<16x128xf32, #tpu.memory_space<vmem>>, vector<16x128xf32>
    %c0_2 = arith.constant 0 : index
    %c0_3 = arith.constant 0 : index
    %4 = vector.load %arg3[%c0_2, %c0_3] : memref<16x128xf32, #tpu.memory_space<vmem>>, vector<16x128xf32>
    %5 = arith.truncf %4 : vector<16x128xf32> to vector<16x128xbf16>
    %c0_4 = arith.constant 0 : index
    %c0_5 = arith.constant 0 : index
    %6 = vector.load %arg4[%c0_4, %c0_5] : memref<128x128xbf16, #tpu.memory_space<vmem>>, vector<128x128xbf16>
    %cst = arith.constant dense<0.000000e+00> : vector<16x128xf32>
    %7 = tpu.matmul %5, %6, %cst {dimension_numbers = #tpu.dot_dimension_numbers<[1], [1], [0], [0], [0, 0, 1, 0], [], []>} : vector<16x128xbf16>, vector<128x128xbf16>, vector<16x128xf32> -> vector<16x128xf32>
    %8 = arith.addf %3, %7 : vector<16x128xf32>
    %c0_6 = arith.constant 0 : index
    %c0_7 = arith.constant 0 : index
    %9 = vector.load %arg7[%c0_6, %c0_7] : memref<16x128xf32, #tpu.memory_space<vmem>>, vector<16x128xf32>
    tpu.vector_store %arg7[%c0_6, %c0_7], %8 {strides = array<i32>} : memref<16x128xf32, #tpu.memory_space<vmem>>, vector<16x128xf32>,
    %c0_i32_8 = arith.constant 0 : i32
    %10 = arith.cmpi eq, %arg2, %c0_i32_8 : i32
    %11 = arith.extui %10 : i1 to i32
    %c0_i32_9 = arith.constant 0 : i32
    %12 = arith.cmpi ne, %11, %c0_i32_9 : i32
    scf.if %12 {
      %c0_10 = arith.constant 0 : index
      %c0_11 = arith.constant 0 : index
      %13 = vector.load %arg7[%c0_10, %c0_11] : memref<16x128xf32, #tpu.memory_space<vmem>>, vector<16x128xf32>
      %c0_12 = arith.constant 0 : index
      %14 = memref.load %arg6[%c0_12] : memref<1xf32, #tpu.memory_space<smem>>
      %15 = vector.broadcast %14 : f32 to vector<16x128xf32>
      %16 = arith.mulf %13, %15 : vector<16x128xf32>
      %c0_13 = arith.constant 0 : index
      %c0_14 = arith.constant 0 : index
      %17 = vector.load %arg5[%c0_13, %c0_14] : memref<1x128xf32, #tpu.memory_space<vmem>>, vector<1x128xf32>
      %18 = vector.broadcast %17 : vector<1x128xf32> to vector<16x128xf32>
      %19 = arith.addf %16, %18 : vector<16x128xf32>
      %c0_15 = arith.constant 0 : index
      %c0_16 = arith.constant 0 : index
      %20 = vector.load %arg7[%c0_15, %c0_16] : memref<16x128xf32, #tpu.memory_space<vmem>>, vector<16x128xf32>
      tpu.vector_store %arg7[%c0_15, %c0_16], %19 {strides = array<i32>} : memref<16x128xf32, #tpu.memory_space<vmem>>, vector<16x128xf32>,
    } else {
    }
    return
  }
  func.func @transform_0(%arg0: i32, %arg1: i32, %arg2: i32) -> (i32, i32) {
    %c0_i32 = arith.constant 0 : i32
    return %arg0, %arg2 : i32, i32
  }
  func.func @transform_1(%arg0: i32, %arg1: i32, %arg2: i32) -> (i32, i32) {
    %c0_i32 = arith.constant 0 : i32
    return %arg1, %arg2 : i32, i32
  }
  func.func @transform_2(%arg0: i32, %arg1: i32, %arg2: i32) -> (i32, i32) {
    %c0_i32 = arith.constant 0 : i32
    %c0_i32_0 = arith.constant 0 : i32
    return %c0_i32, %arg1 : i32, i32
  }
  func.func @transform_3(%arg0: i32, %arg1: i32, %arg2: i32) -> i32 {
    %c0_i32 = arith.constant 0 : i32
    %c0_i32_0 = arith.constant 0 : i32
    return %c0_i32 : i32
  }
  func.func @transform_4(%arg0: i32, %arg1: i32, %arg2: i32) -> (i32, i32) {
    %c0_i32 = arith.constant 0 : i32
    return %arg0, %arg1 : i32, i32
  }
}

</mosaic_0001>

<bundles_post_ra>
// kernel: qlinear_forward.3
= control target key start
LH: loop header
LB: loop body
LE: loop exit
PB: predicated region body
PF: predicated region fallthrough
CT: control target
= control target key end

     0   :  { %s73_s0 = inlined_call_operand.vmem [shape: f32[16,128], index: 0, kind: input, shape index: {}]   ;;  %s74_s1 = inlined_call_operand.vmem [shape: f32[1,8,128], index: 1, kind: output, shape index: {}]  }
   0x1   :  { %v30_v0 = vld [vmem:[%s73_s0] sm:$0xff]  ;;  %v31_v1 = vld [vmem:[%s73_s0 + $0x8] sm:$0xff] }
   0x2   :  { %v32_v2 = vand.u32 2147483647, %v30_v0  ;;  %v33_v3 = vand.u32 2147483647, %v31_v1 }
   0x4   :  { %v40_v4 = vadd.f32 %v33_v3, %v32_v2 }
   0x6   :  { %42 = vst [vmem:[%s74_s1] sm:$0xff] %v40_v4 }

// kernel: qlinear_forward.4
= control target key start
LH: loop header
LB: loop body
LE: loop exit
PB: predicated region body
PF: predicated region fallthrough
CT: control target
= control target key end

     0   :  { %vm87_vm0 = vcmask 257024   ;;  %s200_s1 = inlined_call_operand.<no memory space> [shape: f32[1], index: 1, kind: input, shape index: {}]   ;;  %s201_s0 = inlined_call_operand.vmem [shape: f32[64,32], index: 0, kind: input, shape index: {}]   ;;  %s202_s2 = inlined_call_operand.vmem [shape: bf16[64,32], index: 2, kind: output, shape index: {}]  }
   0x1   :  { %v21_v0 = vstv %s200_s1  ;;  %v13_v1 = vld [vmem:[%s201_s0] sm:$0xff]  ;;  %v14_v2 = vld [vmem:[%s201_s0 + $0x8] sm:$0xff]  ;;  %v15_v3 = vld [vmem:[%s201_s0 + $0x10] sm:$0xff] }
   0x2   :  { %124 = vrcp.f32 %v21_v0  ;;  %v16_v4 = vld [vmem:[%s201_s0 + $0x18] sm:$0xff]  ;;  %v17_v5 = vld [vmem:[%s201_s0 + $0x20] sm:$0xff]  ;;  %v18_v6 = vld [vmem:[%s201_s0 + $0x28] sm:$0xff] }
   0x3   :  { %v19_v7 = vld [vmem:[%s201_s0 + $0x30] sm:$0xff]  ;;  %v20_v8 = vld [vmem:[%s201_s0 + $0x38] sm:$0xff] }
   0xc   :  { %v125_v9 = vpop.eup %124 }
   0xd   :  { %v23_v10 = vmul.f32 %v125_v9, %v13_v1  ;;  %v24_v11 = vmul.f32 %v125_v9, %v14_v2  ;;  %v25_v12 = vmul.f32 %v125_v9, %v15_v3  ;;  %v26_v13 = vmul.f32 %v125_v9, %v16_v4 }
   0xe   :  { %v27_v14 = vmul.f32 %v125_v9, %v17_v5  ;;  %v28_v15 = vmul.f32 %v125_v9, %v18_v6  ;;  %v29_v16 = vmul.f32 %v125_v9, %v19_v7  ;;  %v30_v17 = vmul.f32 %v125_v9, %v20_v8 }
   0xf   :  { %v31_v18 = vmax.f32 %v23_v10, -128.0  ;;  %v32_v19 = vmax.f32 %v24_v11, -128.0  ;;  %v33_v20 = vmax.f32 %v25_v12, -128.0  ;;  %v34_v21 = vmax.f32 %v26_v13, -128.0 }
  0x10   :  { %v35_v22 = vmax.f32 %v27_v14, -128.0  ;;  %v36_v23 = vmax.f32 %v28_v15, -128.0  ;;  %v37_v24 = vmax.f32 %v29_v16, -128.0  ;;  %v38_v25 = vmax.f32 %v30_v17, -128.0 }
  0x11   :  { %v39_v26 = vmin.f32 %v31_v18, 127.0  ;;  %v40_v27 = vmin.f32 %v32_v19, 127.0  ;;  %v41_v28 = vmin.f32 %v33_v20, 127.0  ;;  %v42_v29 = vmin.f32 %v34_v21, 127.0 }
  0x12   :  { %v43_v30 = vmin.f32 %v35_v22, 127.0  ;;  %v44_v31 = vmin.f32 %v36_v23, 127.0  ;;  %v45_v32 = vmin.f32 %v37_v24, 127.0  ;;  %v46_v33 = vmin.f32 %v38_v25, 127.0 }
  0x13   :  { %v116_v34 = vround.rtne.f32 %v39_v26  ;;  %v117_v35 = vround.rtne.f32 %v40_v27  ;;  %v118_v36 = vround.rtne.f32 %v41_v28  ;;  %v119_v37 = vround.rtne.f32 %v42_v29 }
  0x14   :  { %v120_v38 = vround.rtne.f32 %v43_v30  ;;  %v121_v39 = vround.rtne.f32 %v44_v31  ;;  %v122_v40 = vround.rtne.f32 %v45_v32  ;;  %v123_v41 = vround.rtne.f32 %v46_v33 }
  0x15   :  { %v108_v42 = vpack.c.bf16 %v116_v34, %v116_v34  ;;  %v109_v43 = vpack.c.bf16 %v117_v35, %v117_v35  ;;  %v110_v44 = vpack.c.bf16 %v118_v36, %v118_v36  ;;  %v111_v45 = vpack.c.bf16 %v119_v37, %v119_v37 }
  0x16   :  { %v112_v46 = vpack.c.bf16 %v120_v38, %v120_v38  ;;  %v113_v47 = vpack.c.bf16 %v121_v39, %v121_v39  ;;  %v114_v48 = vpack.c.bf16 %v122_v40, %v122_v40  ;;  %v115_v49 = vpack.c.bf16 %v123_v41, %v123_v41 }
  0x17   :  { %88 = vst.msk [vmem:[%s202_s2] sm:$0xf] %vm87_vm0, %v108_v42  ;;  %89 = vst.msk [vmem:[%s202_s2 + $0x4] sm:$0xf] %vm87_vm0, %v109_v43 }
  0x18   :  { %90 = vst.msk [vmem:[%s202_s2 + $0x8] sm:$0xf] %vm87_vm0, %v110_v44  ;;  %91 = vst.msk [vmem:[%s202_s2 + $0xc] sm:$0xf] %vm87_vm0, %v111_v45 }
  0x19   :  { %92 = vst.msk [vmem:[%s202_s2 + $0x10] sm:$0xf] %vm87_vm0, %v112_v46  ;;  %93 = vst.msk [vmem:[%s202_s2 + $0x14] sm:$0xf] %vm87_vm0, %v113_v47 }
  0x1a   :  { %94 = vst.msk [vmem:[%s202_s2 + $0x18] sm:$0xf] %vm87_vm0, %v114_v48  ;;  %95 = vst.msk [vmem:[%s202_s2 + $0x1c] sm:$0xf] %vm87_vm0, %v115_v49 }

// kernel: qlinear_forward.5
= control target key start
LH: loop header
LB: loop body
LE: loop exit
PB: predicated region body
PF: predicated region fallthrough
CT: control target
= control target key end

     0   :  { %v211_v0 = vmov 0.0   ;;  %vm212_vm0 = vmmov 0   ;;  %s280_s1 = inlined_call_operand.vmem [shape: bf16[128,128], index: 1, kind: input, shape index: {}]   ;;  %s281_s0 = inlined_call_operand.vmem [shape: f32[16,128], index: 0, kind: input, shape index: {}]   ;;  %s282_s3 = inlined_call_operand.<no memory space> [shape: f32[1], index: 3, kind: input, shape index: {}]   ;;  %s283_s2 = inlined_call_operand.vmem [shape: f32[1,128], index: 2, kind: input, shape index: {}]   ;;  %s284_s4 = inlined_call_operand.vmem [shape: f32[16,128], index: 4, kind: output, shape index: {}]  }
   0x1   :  { %181 = vmatprep.subr.bf16.mxu0 %v211_v0  ;;  %v203_v1 = vld [vmem:[%s280_s1] sm:$0xff]   ;;  %197 = vmatprep.mubr.msk.bf16.mxu0 %vm212_vm0, %v211_v0  ;;  %v204_v2 = vld [vmem:[%s280_s1 + $0x8] sm:$0xff]   ;;  %v205_v3 = vld [vmem:[%s280_s1 + $0x10] sm:$0xff]   ;;  %v145_v13 = vstv %s282_s3 }
   0x2   :  { %182 = vmatpush3.bf16.xpose.msra.mxu0 %v203_v1  ;;  %v206_v4 = vld [vmem:[%s280_s1 + $0x18] sm:$0xff]   ;;  %v207_v5 = vld [vmem:[%s280_s1 + $0x20] sm:$0xff]   ;;  %v208_v6 = vld [vmem:[%s280_s1 + $0x28] sm:$0xff]  }
   0x3   :  { %183 = vmatprep.subr.bf16.mxu0 %v211_v0  ;;  %v209_v7 = vld [vmem:[%s280_s1 + $0x30] sm:$0xff]   ;;  %v210_v8 = vld [vmem:[%s280_s1 + $0x38] sm:$0xff]   ;;  %v27_v9 = vld [vmem:[%s281_s0] sm:$0xff] }
   0x4   :  { %v28_v10 = vld [vmem:[%s281_s0 + $0x8] sm:$0xff]  ;;  %v171_v15 = vld [vmem:[%s283_s2] ss:$0 sm:$0xff] }
   0x5   :  { %v29_v11 = vpack.c.bf16 %v28_v10, %v27_v9 }
   0xa   :  { %184 = vmatpush3.bf16.xpose.msra.mxu0 %v204_v2 }
   0xb   :  { %185 = vmatprep.subr.bf16.mxu0 %v211_v0 }
  0x12   :  { %186 = vmatpush3.bf16.xpose.msra.mxu0 %v205_v3 }
  0x13   :  { %187 = vmatprep.subr.bf16.mxu0 %v211_v0 }
  0x1a   :  { %188 = vmatpush3.bf16.xpose.msra.mxu0 %v206_v4 }
  0x1b   :  { %189 = vmatprep.subr.bf16.mxu0 %v211_v0 }
  0x22   :  { %190 = vmatpush3.bf16.xpose.msra.mxu0 %v207_v5 }
  0x23   :  { %191 = vmatprep.subr.bf16.mxu0 %v211_v0 }
  0x2a   :  { %192 = vmatpush3.bf16.xpose.msra.mxu0 %v208_v6 }
  0x2b   :  { %193 = vmatprep.subr.bf16.mxu0 %v211_v0 }
  0x32   :  { %194 = vmatpush3.bf16.xpose.msra.mxu0 %v209_v7 }
  0x33   :  { %195 = vmatprep.subr.bf16.mxu0 %v211_v0 }
  0x3a   :  { %196 = vmatpush3.bf16.xpose.msra.mxu0 %v210_v8 }
  0x41   :  { %198 = vmatmul.mubr.bf16.vlgmr.msra.gmra.mrb[0].mxu0 %v29_v11 }
 0x114   :  { %v128_v12 = vpop.f32.mrb[0].mxu0 }
 0x115   :  { %v199_v14 = vpop.f32.mrb[1].mxu0  ;;  %v146_v17 = vmul.f32 %v145_v13, %v128_v12 }
 0x116   :  { %v131_v16 = vpop.f32.mrb[2].mxu0 }
 0x117   :  { %v200_v18 = vpop.f32.mrb[3].mxu0  ;;  %v155_v19 = vadd.f32 %v171_v15, %v146_v17  ;;  %v147_v20 = vmul.f32 %v145_v13, %v131_v16 }
 0x119   :  { %157 = vst [vmem:[%s284_s4] sm:$0xff] %v155_v19  ;;  %v156_v21 = vadd.f32 %v171_v15, %v147_v20 }
 0x11b   :  { %158 = vst [vmem:[%s284_s4 + $0x8] sm:$0xff] %v156_v21 }

</bundles_post_ra>
